<compile_context>
chip_gen: v6e
topology: v6e:2x2x1
jax: 0.10.0
libtpu: 0.0.40
codegen_flags: <defaults>
</compile_context>

<pallas_src>
import jax
import jax.numpy as jnp
from jax.experimental import pallas as pl
from jax.experimental.pallas import tpu as pltpu

N_HID = 2    # true m1 output width (live hidden features)
N_OUT = 10   # m2 output width


def fused_kernel(w1p_ref, b1_ref, w2c_ref, b2_ref, x_ref, o_ref):
    """One lane-dense tile of: cat -> Linear(1,2) -> +x -> relu -> Linear(10,10).

    w1p_ref : SMEM f32[2]       1 + m1.weight[:, 0]   (residual add folded in)
    b1_ref  : SMEM f32[2]       m1.bias
    w2c_ref : SMEM f32[20]      [W2[:, 0], W2[:, 1]]  (only live m2 columns)
    b2_ref  : SMEM f32[10]      m2.bias
    x_ref   : VMEM f32[1, T]    lane-dense flattened input tile
    o_ref   : VMEM f32[20, T]   rows 0..9 = cat copy 0, rows 10..19 = cat copy 1
    """
    x = x_ref[...]                                                     # (1, T)
    # h_i = relu(x*(1+w1_i) + b1_i) -- scalar broadcasts from SMEM, pure VPU
    h0 = jnp.maximum(x * w1p_ref[0] + b1_ref[0], 0.0)                  # (1, T)
    h1 = jnp.maximum(x * w1p_ref[1] + b1_ref[1], 0.0)                  # (1, T)
    # m2 on the hidden zero-padded to 10 features: per-feature scalar FMAs.
    rows = [h0 * w2c_ref[f] + h1 * w2c_ref[N_OUT + f] + b2_ref[f]
            for f in range(N_OUT)]
    res = jnp.concatenate(rows, axis=0)                                # (10, T)
    # cat([x, x], dim=1): two slice stores of the same result.
    o_ref[0:N_OUT, :] = res
    o_ref[N_OUT:2 * N_OUT, :] = res


def prepare_params(w1, b1, w2, b2):
    """One-time parameter preprocessing (hoisted out of the forward path)."""
    return {
        # residual add folded into the m1 weight: h = relu(x*(1+w1) + b1)
        "w1p": (1.0 + w1.reshape(N_HID)).astype(jnp.float32),                 # (2,)
        "b1": b1.reshape(N_HID).astype(jnp.float32),                          # (2,)
        # flat [W2[:,0], W2[:,1]] -> w2c[f] = W2[f,0], w2c[10+f] = W2[f,1]
        "w2c": jnp.concatenate([w2[:, 0], w2[:, 1]]).astype(jnp.float32),     # (20,)
        "b2": b2.reshape(N_OUT).astype(jnp.float32),                          # (10,)
    }


def _round_up(n, m):
    return ((n + m - 1) // m) * m


@jax.jit
def model_forward(x, params):
    """x: (B, S, 1) f32.  Returns (B, 2S, 10) f32."""
    B, S, F = x.shape
    assert F == 1, "m1 = Linear(1, 2) requires last dim 1"

    N = B * S
    TILE = min(2048, _round_up(N, 128))       # lane-dense tile, multiple of 128
    N_pad = _round_up(N, TILE)
    grid = (N_pad // TILE,)

    x_flat = x.reshape(1, N)
    if N_pad != N:
        x_flat = jnp.pad(x_flat, ((0, 0), (0, N_pad - N)))

    cost = pl.CostEstimate(
        flops=46 * N_pad,
        transcendentals=0,
        bytes_accessed=4 * (N_pad + 2 * N_OUT * N_pad + 34),
    )
    smem = pl.BlockSpec(memory_space=pltpu.MemorySpace.SMEM)

    out = pl.pallas_call(
        fused_kernel,
        out_shape=jax.ShapeDtypeStruct((2 * N_OUT, N_pad), jnp.float32),
        grid=grid,
        in_specs=[
            smem,                                         # w1p (2,)
            smem,                                         # b1  (2,)
            smem,                                         # w2c (20,)
            smem,                                         # b2  (10,)
            pl.BlockSpec((1, TILE), lambda i: (0, i)),    # x, lane-dense
        ],
        out_specs=pl.BlockSpec((2 * N_OUT, TILE), lambda i: (0, i)),
        compiler_params=pltpu.CompilerParams(
            dimension_semantics=("parallel",),            # shards across v7x's 2 TCs
            vmem_limit_bytes=32 * 1024 * 1024,
        ),
        cost_estimate=cost,
    )(params["w1p"], params["b1"], params["w2c"], params["b2"], x_flat)

    # Wrapper-side layout plumbing: (20, N) -> (B, 2S, 10).
    out = out[:, :N]
    out = out.reshape(2, N_OUT, B, S).transpose(2, 0, 3, 1)   # (B, 2, S, 10)
    return out.reshape(B, 2 * S, N_OUT)


def reference_forward(x, w1, b1, w2, b2):
    """Pure-JAX reference of the (shape-consistent interpretation of the) model."""
    x_cat = jnp.concatenate([x, x], axis=1)                    # (B, 2S, 1)
    m1 = x_cat @ w1.T + b1                                     # (B, 2S, 2)
    h = jax.nn.relu(x_cat + m1)                                # broadcast add
    h10 = jnp.pad(h, ((0, 0), (0, 0), (0, N_OUT - N_HID)))     # zero-pad to 10 feats
    return h10 @ w2.T + b2                                     # (B, 2S, 10)


if __name__ == "__main__":
    key = jax.random.PRNGKey(0)
    kx, k1, k2, k3, k4, kx2 = jax.random.split(key, 6)

    B, S = 3, 2
    x = jax.random.normal(kx, (B, S, 1), jnp.float32)

    # PyTorch-Linear-style init: U(-1/sqrt(fan_in), 1/sqrt(fan_in))
    w1 = jax.random.uniform(k1, (2, 1), jnp.float32, -1.0, 1.0)          # fan_in=1
    b1 = jax.random.uniform(k2, (2,), jnp.float32, -1.0, 1.0)
    bound2 = 1.0 / jnp.sqrt(10.0)
    w2 = jax.random.uniform(k3, (10, 10), jnp.float32, -bound2, bound2)  # fan_in=10
    b2 = jax.random.uniform(k4, (10,), jnp.float32, -bound2, bound2)

    params = prepare_params(w1, b1, w2, b2)   # one-time, NOT in the forward path

    out = jax.block_until_ready(model_forward(x, params))
    ref = reference_forward(x, w1, b1, w2, b2)
    assert out.shape == (B, 2 * S, N_OUT), out.shape
    assert jnp.allclose(out, ref, atol=1e-5, rtol=1e-5), "mismatch vs reference (small)"

    # Also exercise the multi-tile, padded, parallel-grid path (N=2560 -> grid=(2,)).
    B2, S2 = 4, 640
    x2 = jax.random.normal(kx2, (B2, S2, 1), jnp.float32)
    out2 = jax.block_until_ready(model_forward(x2, params))
    ref2 = reference_forward(x2, w1, b1, w2, b2)
    assert out2.shape == (B2, 2 * S2, N_OUT), out2.shape
    assert jnp.allclose(out2, ref2, atol=1e-5, rtol=1e-5), "mismatch vs reference (tiled)"

    print("KERNEL_OK")
</pallas_src>

<mosaic_0001>
module attributes {stable_mosaic.version = 11 : i64} {
  func.func @fused_kernel(%arg0: i32, %arg1: memref<2xf32, #tpu.memory_space<smem>>, %arg2: memref<2xf32, #tpu.memory_space<smem>>, %arg3: memref<20xf32, #tpu.memory_space<smem>>, %arg4: memref<10xf32, #tpu.memory_space<smem>>, %arg5: memref<1x128xf32, #tpu.memory_space<vmem>>, %arg6: memref<20x128xf32, #tpu.memory_space<vmem>>) attributes {dimension_semantics = [#tpu.dimension_semantics<parallel>], iteration_bounds = array<i64: 1>, scalar_prefetch = 0 : i64, scratch_operands = 0 : i64, tpu.core_type = #tpu.core_type<tc>, window_params = [{transform_indices = @transform_0, window_bounds = array<i64: 2>}, {transform_indices = @transform_1, window_bounds = array<i64: 2>}, {transform_indices = @transform_2, window_bounds = array<i64: 20>}, {transform_indices = @transform_3, window_bounds = array<i64: 10>}, {transform_indices = @transform_4, window_bounds = array<i64: 1, 128>}, {transform_indices = @transform_5, window_bounds = array<i64: 20, 128>}]} {
    %c0 = arith.constant 0 : index
    %c0_0 = arith.constant 0 : index
    %0 = vector.load %arg5[%c0, %c0_0] : memref<1x128xf32, #tpu.memory_space<vmem>>, vector<1x128xf32>
    %c0_1 = arith.constant 0 : index
    %1 = memref.load %arg1[%c0_1] : memref<2xf32, #tpu.memory_space<smem>>
    %2 = vector.broadcast %1 : f32 to vector<1x128xf32>
    %3 = arith.mulf %0, %2 : vector<1x128xf32>
    %c0_2 = arith.constant 0 : index
    %4 = memref.load %arg2[%c0_2] : memref<2xf32, #tpu.memory_space<smem>>
    %5 = vector.broadcast %4 : f32 to vector<1x128xf32>
    %6 = arith.addf %3, %5 : vector<1x128xf32>
    %cst = arith.constant 0.000000e+00 : f32
    %7 = vector.broadcast %cst : f32 to vector<1x128xf32>
    %8 = arith.maximumf %6, %7 : vector<1x128xf32>
    %c1 = arith.constant 1 : index
    %9 = memref.load %arg1[%c1] : memref<2xf32, #tpu.memory_space<smem>>
    %10 = vector.broadcast %9 : f32 to vector<1x128xf32>
    %11 = arith.mulf %0, %10 : vector<1x128xf32>
    %c1_3 = arith.constant 1 : index
    %12 = memref.load %arg2[%c1_3] : memref<2xf32, #tpu.memory_space<smem>>
    %13 = vector.broadcast %12 : f32 to vector<1x128xf32>
    %14 = arith.addf %11, %13 : vector<1x128xf32>
    %cst_4 = arith.constant 0.000000e+00 : f32
    %15 = vector.broadcast %cst_4 : f32 to vector<1x128xf32>
    %16 = arith.maximumf %14, %15 : vector<1x128xf32>
    %c0_5 = arith.constant 0 : index
    %17 = memref.load %arg3[%c0_5] : memref<20xf32, #tpu.memory_space<smem>>
    %18 = vector.broadcast %17 : f32 to vector<1x128xf32>
    %19 = arith.mulf %8, %18 : vector<1x128xf32>
    %c10 = arith.constant 10 : index
    %20 = memref.load %arg3[%c10] : memref<20xf32, #tpu.memory_space<smem>>
    %21 = vector.broadcast %20 : f32 to vector<1x128xf32>
    %22 = arith.mulf %16, %21 : vector<1x128xf32>
    %23 = arith.addf %19, %22 : vector<1x128xf32>
    %c0_6 = arith.constant 0 : index
    %24 = memref.load %arg4[%c0_6] : memref<10xf32, #tpu.memory_space<smem>>
    %25 = vector.broadcast %24 : f32 to vector<1x128xf32>
    %26 = arith.addf %23, %25 : vector<1x128xf32>
    %c1_7 = arith.constant 1 : index
    %27 = memref.load %arg3[%c1_7] : memref<20xf32, #tpu.memory_space<smem>>
    %28 = vector.broadcast %27 : f32 to vector<1x128xf32>
    %29 = arith.mulf %8, %28 : vector<1x128xf32>
    %c11 = arith.constant 11 : index
    %30 = memref.load %arg3[%c11] : memref<20xf32, #tpu.memory_space<smem>>
    %31 = vector.broadcast %30 : f32 to vector<1x128xf32>
    %32 = arith.mulf %16, %31 : vector<1x128xf32>
    %33 = arith.addf %29, %32 : vector<1x128xf32>
    %c1_8 = arith.constant 1 : index
    %34 = memref.load %arg4[%c1_8] : memref<10xf32, #tpu.memory_space<smem>>
    %35 = vector.broadcast %34 : f32 to vector<1x128xf32>
    %36 = arith.addf %33, %35 : vector<1x128xf32>
    %c2 = arith.constant 2 : index
    %37 = memref.load %arg3[%c2] : memref<20xf32, #tpu.memory_space<smem>>
    %38 = vector.broadcast %37 : f32 to vector<1x128xf32>
    %39 = arith.mulf %8, %38 : vector<1x128xf32>
    %c12 = arith.constant 12 : index
    %40 = memref.load %arg3[%c12] : memref<20xf32, #tpu.memory_space<smem>>
    %41 = vector.broadcast %40 : f32 to vector<1x128xf32>
    %42 = arith.mulf %16, %41 : vector<1x128xf32>
    %43 = arith.addf %39, %42 : vector<1x128xf32>
    %c2_9 = arith.constant 2 : index
    %44 = memref.load %arg4[%c2_9] : memref<10xf32, #tpu.memory_space<smem>>
    %45 = vector.broadcast %44 : f32 to vector<1x128xf32>
    %46 = arith.addf %43, %45 : vector<1x128xf32>
    %c3 = arith.constant 3 : index
    %47 = memref.load %arg3[%c3] : memref<20xf32, #tpu.memory_space<smem>>
    %48 = vector.broadcast %47 : f32 to vector<1x128xf32>
    %49 = arith.mulf %8, %48 : vector<1x128xf32>
    %c13 = arith.constant 13 : index
    %50 = memref.load %arg3[%c13] : memref<20xf32, #tpu.memory_space<smem>>
    %51 = vector.broadcast %50 : f32 to vector<1x128xf32>
    %52 = arith.mulf %16, %51 : vector<1x128xf32>
    %53 = arith.addf %49, %52 : vector<1x128xf32>
    %c3_10 = arith.constant 3 : index
    %54 = memref.load %arg4[%c3_10] : memref<10xf32, #tpu.memory_space<smem>>
    %55 = vector.broadcast %54 : f32 to vector<1x128xf32>
    %56 = arith.addf %53, %55 : vector<1x128xf32>
    %c4 = arith.constant 4 : index
    %57 = memref.load %arg3[%c4] : memref<20xf32, #tpu.memory_space<smem>>
    %58 = vector.broadcast %57 : f32 to vector<1x128xf32>
    %59 = arith.mulf %8, %58 : vector<1x128xf32>
    %c14 = arith.constant 14 : index
    %60 = memref.load %arg3[%c14] : memref<20xf32, #tpu.memory_space<smem>>
    %61 = vector.broadcast %60 : f32 to vector<1x128xf32>
    %62 = arith.mulf %16, %61 : vector<1x128xf32>
    %63 = arith.addf %59, %62 : vector<1x128xf32>
    %c4_11 = arith.constant 4 : index
    %64 = memref.load %arg4[%c4_11] : memref<10xf32, #tpu.memory_space<smem>>
    %65 = vector.broadcast %64 : f32 to vector<1x128xf32>
    %66 = arith.addf %63, %65 : vector<1x128xf32>
    %c5 = arith.constant 5 : index
    %67 = memref.load %arg3[%c5] : memref<20xf32, #tpu.memory_space<smem>>
    %68 = vector.broadcast %67 : f32 to vector<1x128xf32>
    %69 = arith.mulf %8, %68 : vector<1x128xf32>
    %c15 = arith.constant 15 : index
    %70 = memref.load %arg3[%c15] : memref<20xf32, #tpu.memory_space<smem>>
    %71 = vector.broadcast %70 : f32 to vector<1x128xf32>
    %72 = arith.mulf %16, %71 : vector<1x128xf32>
    %73 = arith.addf %69, %72 : vector<1x128xf32>
    %c5_12 = arith.constant 5 : index
    %74 = memref.load %arg4[%c5_12] : memref<10xf32, #tpu.memory_space<smem>>
    %75 = vector.broadcast %74 : f32 to vector<1x128xf32>
    %76 = arith.addf %73, %75 : vector<1x128xf32>
    %c6 = arith.constant 6 : index
    %77 = memref.load %arg3[%c6] : memref<20xf32, #tpu.memory_space<smem>>
    %78 = vector.broadcast %77 : f32 to vector<1x128xf32>
    %79 = arith.mulf %8, %78 : vector<1x128xf32>
    %c16 = arith.constant 16 : index
    %80 = memref.load %arg3[%c16] : memref<20xf32, #tpu.memory_space<smem>>
    %81 = vector.broadcast %80 : f32 to vector<1x128xf32>
    %82 = arith.mulf %16, %81 : vector<1x128xf32>
    %83 = arith.addf %79, %82 : vector<1x128xf32>
    %c6_13 = arith.constant 6 : index
    %84 = memref.load %arg4[%c6_13] : memref<10xf32, #tpu.memory_space<smem>>
    %85 = vector.broadcast %84 : f32 to vector<1x128xf32>
    %86 = arith.addf %83, %85 : vector<1x128xf32>
    %c7 = arith.constant 7 : index
    %87 = memref.load %arg3[%c7] : memref<20xf32, #tpu.memory_space<smem>>
    %88 = vector.broadcast %87 : f32 to vector<1x128xf32>
    %89 = arith.mulf %8, %88 : vector<1x128xf32>
    %c17 = arith.constant 17 : index
    %90 = memref.load %arg3[%c17] : memref<20xf32, #tpu.memory_space<smem>>
    %91 = vector.broadcast %90 : f32 to vector<1x128xf32>
    %92 = arith.mulf %16, %91 : vector<1x128xf32>
    %93 = arith.addf %89, %92 : vector<1x128xf32>
    %c7_14 = arith.constant 7 : index
    %94 = memref.load %arg4[%c7_14] : memref<10xf32, #tpu.memory_space<smem>>
    %95 = vector.broadcast %94 : f32 to vector<1x128xf32>
    %96 = arith.addf %93, %95 : vector<1x128xf32>
    %c8 = arith.constant 8 : index
    %97 = memref.load %arg3[%c8] : memref<20xf32, #tpu.memory_space<smem>>
    %98 = vector.broadcast %97 : f32 to vector<1x128xf32>
    %99 = arith.mulf %8, %98 : vector<1x128xf32>
    %c18 = arith.constant 18 : index
    %100 = memref.load %arg3[%c18] : memref<20xf32, #tpu.memory_space<smem>>
    %101 = vector.broadcast %100 : f32 to vector<1x128xf32>
    %102 = arith.mulf %16, %101 : vector<1x128xf32>
    %103 = arith.addf %99, %102 : vector<1x128xf32>
    %c8_15 = arith.constant 8 : index
    %104 = memref.load %arg4[%c8_15] : memref<10xf32, #tpu.memory_space<smem>>
    %105 = vector.broadcast %104 : f32 to vector<1x128xf32>
    %106 = arith.addf %103, %105 : vector<1x128xf32>
    %c9 = arith.constant 9 : index
    %107 = memref.load %arg3[%c9] : memref<20xf32, #tpu.memory_space<smem>>
    %108 = vector.broadcast %107 : f32 to vector<1x128xf32>
    %109 = arith.mulf %8, %108 : vector<1x128xf32>
    %c19 = arith.constant 19 : index
    %110 = memref.load %arg3[%c19] : memref<20xf32, #tpu.memory_space<smem>>
    %111 = vector.broadcast %110 : f32 to vector<1x128xf32>
    %112 = arith.mulf %16, %111 : vector<1x128xf32>
    %113 = arith.addf %109, %112 : vector<1x128xf32>
    %c9_16 = arith.constant 9 : index
    %114 = memref.load %arg4[%c9_16] : memref<10xf32, #tpu.memory_space<smem>>
    %115 = vector.broadcast %114 : f32 to vector<1x128xf32>
    %116 = arith.addf %113, %115 : vector<1x128xf32>
    %117 = tpu.concatenate %26, %36, %46, %56, %66, %76, %86, %96, %106, %116 in 0 : vector<1x128xf32>, vector<1x128xf32>, vector<1x128xf32>, vector<1x128xf32>, vector<1x128xf32>, vector<1x128xf32>, vector<1x128xf32>, vector<1x128xf32>, vector<1x128xf32>, vector<1x128xf32> -> vector<10x128xf32>
    %c0_17 = arith.constant 0 : index
    %c0_18 = arith.constant 0 : index
    %118 = vector.load %arg6[%c0_17, %c0_18] : memref<20x128xf32, #tpu.memory_space<vmem>>, vector<10x128xf32>
    tpu.vector_store %arg6[%c0_17, %c0_18], %117 {strides = array<i32>} : memref<20x128xf32, #tpu.memory_space<vmem>>, vector<10x128xf32>,
    %c10_19 = arith.constant 10 : index
    %c0_20 = arith.constant 0 : index
    %119 = vector.load %arg6[%c10_19, %c0_20] : memref<20x128xf32, #tpu.memory_space<vmem>>, vector<10x128xf32>
    tpu.vector_store %arg6[%c10_19, %c0_20], %117 {strides = array<i32>} : memref<20x128xf32, #tpu.memory_space<vmem>>, vector<10x128xf32>,
    return
  }
  func.func @transform_0(%arg0: i32) -> i32 {
    %c0_i32 = arith.constant 0 : i32
    %c0_i32_0 = arith.constant 0 : i32
    return %c0_i32 : i32
  }
  func.func @transform_1(%arg0: i32) -> i32 {
    %c0_i32 = arith.constant 0 : i32
    %c0_i32_0 = arith.constant 0 : i32
    return %c0_i32 : i32
  }
  func.func @transform_2(%arg0: i32) -> i32 {
    %c0_i32 = arith.constant 0 : i32
    %c0_i32_0 = arith.constant 0 : i32
    return %c0_i32 : i32
  }
  func.func @transform_3(%arg0: i32) -> i32 {
    %c0_i32 = arith.constant 0 : i32
    %c0_i32_0 = arith.constant 0 : i32
    return %c0_i32 : i32
  }
  func.func @transform_4(%arg0: i32) -> (i32, i32) {
    %c0_i32 = arith.constant 0 : i32
    %c0_i32_0 = arith.constant 0 : i32
    return %c0_i32, %arg0 : i32, i32
  }
  func.func @transform_5(%arg0: i32) -> (i32, i32) {
    %c0_i32 = arith.constant 0 : i32
    %c0_i32_0 = arith.constant 0 : i32
    return %c0_i32, %arg0 : i32, i32
  }
}

</mosaic_0001>

<bundles_post_ra>
// kernel: model_forward.1
= control target key start
LH: loop header
LB: loop body
LE: loop exit
PB: predicated region body
PF: predicated region fallthrough
CT: control target
= control target key end

     0   :  { %10 = vsyncpa [#allocation3], 0  ;;  %s472_s0 = inlined_call_operand.vmem [shape: f32[2], index: 0, kind: input, shape index: {}]   ;;  %s473_s1 = inlined_call_operand.vmem [shape: f32[2], index: 1, kind: input, shape index: {}]   ;;  %s474_s2 = inlined_call_operand.vmem [shape: f32[20], index: 2, kind: input, shape index: {}]   ;;  %s475_s3 = inlined_call_operand.vmem [shape: f32[10], index: 3, kind: input, shape index: {}]   ;;  %s476_s4 = inlined_call_operand.vmem [shape: f32[1,128], index: 4, kind: input, shape index: {}]   ;;  %s477_s5 = inlined_call_operand.vmem [shape: f32[20,128], index: 5, kind: output, shape index: {}]  }
   0x1   :  { %11 = vsyncpa [#allocation5], 0  ;;  %s29_s20 = sshll.u32 %s473_s1, 4  ;;  %s30_s20 = int_to_ptr.vmem [resolvable:$true] %s29_s20 }
   0x2   :  { %12 = vsyncpa [#allocation8], 0  ;;  %s19_s23 = sshll.u32 %s472_s0, 4  ;;  %s291_s24 = scalar_lea.vmem %s30_s20, 16  ;;  %s20_s23 = int_to_ptr.vmem [resolvable:$true] %s19_s23 }
   0x3   :  { %p292_p0 = scmp.ne.s32.totalorder %s30_s20, %s291_s24  ;;  %p296_p1 = scmp.lt.s32.totalorder %s30_s20, %s30_s20 }
   0x4   :  { %p297_p2 = scmp.lt.s32.totalorder %s291_s24, %s291_s24 }
   0x6   :  { %p298_p3 = por %p297_p2, %p296_p1 }
   0x8   :  { %p299_p4 = pnand %p298_p3, %p292_p0 }
   0xa   :  { %302 = shalt.err (!%p299_p4)
}
   0xb   :  { %s345_s25 = smov [#allocation4]   ;;  %s303_s26 = scalar_lea.vmem %s20_s23, 16 }
   0xc   :  { %32 = dma.vmem_to_smem %s30_s20, 16, %s345_s25, [#allocation5]  }
   0xd   :  { %p304_p5 = scmp.ne.s32.totalorder %s20_s23, %s303_s26  ;;  %p308_p6 = scmp.lt.s32.totalorder %s20_s23, %s20_s23 }
   0xe   :  { %p309_p7 = scmp.lt.s32.totalorder %s303_s26, %s303_s26 }
  0x10   :  { %p310_p8 = por %p309_p7, %p308_p6 }
  0x12   :  { %p311_p9 = pnand %p310_p8, %p304_p5 }
  0x14   :  { %314 = shalt.err (!%p311_p9)
}
  0x15   :  { %s346_s1 = smov [#allocation2]   ;;  %s39_s28 = sshll.u32 %s474_s2, 4  ;;  %s40_s28 = int_to_ptr.vmem [resolvable:$true] %s39_s28 }
  0x16   :  { %22 = dma.vmem_to_smem %s20_s23, 16, %s346_s1, [#allocation3]  }
  0x17   :  { %s49_s6 = sshll.u32 %s475_s3, 4  ;;  %s315_s7 = scalar_lea.vmem %s40_s28, 16  ;;  %s50_s6 = int_to_ptr.vmem [resolvable:$true] %s49_s6 }
  0x18   :  { %p316_p10 = scmp.ne.s32.totalorder %s40_s28, %s315_s7  ;;  %p320_p11 = scmp.lt.s32.totalorder %s40_s28, %s40_s28 }
  0x19   :  { %p321_p12 = scmp.lt.s32.totalorder %s315_s7, %s315_s7 }
  0x1b   :  { %p322_p13 = por %p321_p12, %p320_p11 }
  0x1d   :  { %p323_p0 = pnand %p322_p13, %p316_p10 }
  0x1f   :  { %326 = shalt.err (!%p323_p0)
}
  0x20   :  { %s347_s8 = smov [#allocation6]   ;;  %s327_s9 = scalar_lea.vmem %s50_s6, 16 }
  0x21   :  { %42 = dma.vmem_to_smem %s40_s28, 16, %s347_s8, [#allocation5]  }
  0x22   :  { %p328_p1 = scmp.ne.s32.totalorder %s50_s6, %s327_s9  ;;  %p332_p2 = scmp.lt.s32.totalorder %s50_s6, %s50_s6 }
  0x23   :  { %p333_p3 = scmp.lt.s32.totalorder %s327_s9, %s327_s9 }
  0x25   :  { %p334_p4 = por %p333_p3, %p332_p2 }
  0x27   :  { %p335_p5 = pnand %p334_p4, %p328_p1 }
  0x29   :  { %338 = shalt.err (!%p335_p5)
}
  0x2a   :  { %s348_s2 = smov [#allocation7]  }
  0x2b   :  { %52 = dma.vmem_to_smem %s50_s6, 16, %s348_s2, [#allocation8]  }
  0x2c   :  { %339 = dma.done.wait [#allocation3], 16  }
  0x2d   :  { %340 = vsyncadd [#allocation3], 4294967280 }
  0x2e   :  { %341 = dma.done.wait [#allocation5], 32  }
  0x2f   :  { %342 = vsyncadd [#allocation5], 4294967264 }
  0x30   :  { %343 = dma.done.wait [#allocation8], 16  }
  0x31   :  { %344 = vsyncadd [#allocation8], 4294967280 }
  0x32   :  { %67 = sfence }
  0x33   :  { %s69_s3 = sld [smem:[#allocation2]]  ;;  %v68_v0 = vld [vmem:[%s476_s4] sm:$0x1]  ;;  %v184_v5 = vlaneseq  ;;  %vm231_vm0 = vcmask 1040384   ;;  %vm233_vm1 = vcmask 1041408   ;;  %vm235_vm2 = vcmask 1042432  }
  0x34   :  { %s72_s10 = sld [smem:[#allocation4]]  ;;  %vm237_vm3 = vcmask 1043456   ;;  %vm239_vm4 = vcmask 1044480   ;;  %vm241_vm5 = vcmask 1045504   ;;  %vm243_vm6 = vcmask 1046528  }
  0x35   :  { %s257_s11 = sld [smem:[#allocation2 + $0x1]]  ;;  %v185_v13 = vshrl.u32 %v184_v5, 7 }
  0x36   :  { %s258_s12 = sld [smem:[#allocation4 + $0x1]] }
  0x37   :  { %s83_s15 = sld [smem:[#allocation6]]  ;;  %v412_v24 = vsub.s32 0, %v185_v13 }
  0x38   :  { %s259_s16 = sld [smem:[#allocation6 + $0xa]] }
  0x39   :  { %v70_v1 = vstv %s69_s3  ;;  %s394_s17 = sld [smem:[#allocation7]] }
  0x3a   :  { %v71_v2 = vmul.f32 %v70_v1, %v68_v0  ;;  %v73_v3 = vstv %s72_s10  ;;  %s260_s18 = sld [smem:[#allocation6 + $0x1]] }
  0x3b   :  { %v77_v4 = vstv %s257_s11  ;;  %s261_s19 = sld [smem:[#allocation6 + $0xb]] }
  0x3c   :  { %v74_v6 = vadd.f32 %v73_v3, %v71_v2  ;;  %v78_v7 = vmul.f32 %v77_v4, %v68_v0  ;;  %v80_v8 = vstv %s258_s12  ;;  %s396_s20 = sld [smem:[#allocation7 + $0x1]] }
  0x3d   :  { %v84_v9 = vstv %s83_s15  ;;  %s263_s21 = sld [smem:[#allocation6 + $0x2]] }
  0x3e   :  { %v398_v10 = vmax.f32 %v74_v6, 0.0  ;;  %v81_v11 = vadd.f32 %v80_v8, %v78_v7  ;;  %s264_s4 = sld [smem:[#allocation6 + $0xc]]  ;;  %v87_v12 = vstv %s259_s16 }
  0x3f   :  { %s400_s22 = sld [smem:[#allocation7 + $0x2]]  ;;  %v91_v21 = vstv %s394_s17 }
  0x40   :  { %v402_v14 = vmax.f32 %v81_v11, 0.0  ;;  %v85_v15 = vmul.f32 %v84_v9, %v398_v10  ;;  %v94_v16 = vstv %s260_s18  ;;  %s266_s23 = sld [smem:[#allocation6 + $0x3]] }
  0x41   :  { %v95_v17 = vmul.f32 %v94_v16, %v398_v10  ;;  %v97_v18 = vstv %s261_s19  ;;  %s267_s24 = sld [smem:[#allocation6 + $0xd]] }
  0x42   :  { %v88_v19 = vmul.f32 %v87_v12, %v402_v14  ;;  %v98_v20 = vmul.f32 %v97_v18, %v402_v14  ;;  %s408_s25 = sld [smem:[#allocation7 + $0x3]]  ;;  %v101_v22 = vstv %s396_s20 }
  0x43   :  { %v104_v23 = vstv %s263_s21  ;;  %s269_s26 = sld [smem:[#allocation6 + $0x4]] }
  0x44   :  { %v89_v25 = vadd.f32 %v88_v19, %v85_v15  ;;  %v99_v26 = vadd.f32 %v98_v20, %v95_v17  ;;  %v105_v27 = vmul.f32 %v104_v23, %v398_v10  ;;  %v107_v28 = vstv %s264_s4  ;;  %s270_s1 = sld [smem:[#allocation6 + $0xe]] }
  0x45   :  { %v108_v29 = vmul.f32 %v107_v28, %v402_v14  ;;  %s416_s0 = sld [smem:[#allocation7 + $0x4]]  ;;  %v111_v32 = vstv %s400_s22 }
  0x46   :  { %v92_v30 = vadd.f32 %v91_v21, %v89_v25  ;;  %v102_v31 = vadd.f32 %v101_v22, %v99_v26  ;;  %v114_v33 = vstv %s266_s23  ;;  %s272_s27 = sld [smem:[#allocation6 + $0x5]] }
  0x47   :  { %v109_v34 = vadd.f32 %v108_v29, %v105_v27  ;;  %v115_v35 = vmul.f32 %v114_v33, %v398_v10  ;;  %v117_v36 = vstv %s267_s24  ;;  %s273_s28 = sld [smem:[#allocation6 + $0xf]] }
  0x48   :  { %v118_v37 = vmul.f32 %v117_v36, %v402_v14  ;;  %s421_s29 = sld [smem:[#allocation7 + $0x5]]  ;;  %v187_v38 = vrot.slane %v102_v31, %v412_v24  ;;  %v121_v40 = vstv %s408_s25 }
  0x49   :  { %v112_v39 = vadd.f32 %v111_v32, %v109_v34  ;;  %v124_v41 = vstv %s269_s26  ;;  %s275_s30 = sld [smem:[#allocation6 + $0x6]] }
  0x4a   :  { %v119_v42 = vadd.f32 %v118_v37, %v115_v35  ;;  %v125_v43 = vmul.f32 %v124_v41, %v398_v10  ;;  %v127_v44 = vstv %s270_s1  ;;  %s276_s6 = sld [smem:[#allocation6 + $0x10]]  ;;  %v232_v45 = vsel %vm231_vm0, %v92_v30, %v187_v38 }
  0x4b   :  { %v128_v46 = vmul.f32 %v127_v44, %v402_v14  ;;  %s428_s7 = sld [smem:[#allocation7 + $0x6]]  ;;  %v193_v47 = vrot.slane %v112_v39, %v412_v24  ;;  %v131_v49 = vstv %s416_s0 }
  0x4c   :  { %v122_v48 = vadd.f32 %v121_v40, %v119_v42  ;;  %v134_v50 = vstv %s272_s27  ;;  %s278_s8 = sld [smem:[#allocation6 + $0x7]] }
  0x4d   :  { %v129_v51 = vadd.f32 %v128_v46, %v125_v43  ;;  %v135_v52 = vmul.f32 %v134_v50, %v398_v10  ;;  %v137_v53 = vstv %s273_s28  ;;  %s279_s9 = sld [smem:[#allocation6 + $0x11]]  ;;  %v234_v54 = vsel %vm233_vm1, %v232_v45, %v193_v47 }
  0x4e   :  { %v138_v55 = vmul.f32 %v137_v53, %v402_v14  ;;  %s435_s2 = sld [smem:[#allocation7 + $0x7]]  ;;  %v199_v56 = vrot.slane %v122_v48, %v412_v24  ;;  %v141_v58 = vstv %s421_s29 }
  0x4f   :  { %v132_v57 = vadd.f32 %v131_v49, %v129_v51  ;;  %v144_v59 = vstv %s275_s30  ;;  %s281_s3 = sld [smem:[#allocation6 + $0x8]] }
  0x50   :  { %v139_v60 = vadd.f32 %v138_v55, %v135_v52  ;;  %v145_v61 = vmul.f32 %v144_v59, %v398_v10  ;;  %v147_v62 = vstv %s276_s6  ;;  %v236_v63 = vsel %vm235_vm2, %v234_v54, %v199_v56  ;;  %s282_s10 = sld [smem:[#allocation6 + $0x12]] }
  0x51   :  { %v148_v0 = vmul.f32 %v147_v62, %v402_v14  ;;  %v205_v1 = vrot.slane %v132_v57, %v412_v24  ;;  %s443_s11 = sld [smem:[#allocation7 + $0x8]]  ;;  %v151_v3 = vstv %s428_s7 }
  0x52   :  { %v142_v2 = vadd.f32 %v141_v58, %v139_v60  ;;  %v154_v4 = vstv %s278_s8  ;;  %s284_s12 = sld [smem:[#allocation6 + $0x9]] }
  0x53   :  { %v149_v5 = vadd.f32 %v148_v0, %v145_v61  ;;  %v155_v6 = vmul.f32 %v154_v4, %v398_v10  ;;  %v157_v7 = vstv %s279_s9  ;;  %v238_v8 = vsel %vm237_vm3, %v236_v63, %v205_v1  ;;  %s285_s13 = sld [smem:[#allocation6 + $0x13]] }
  0x54   :  { %v158_v9 = vmul.f32 %v157_v7, %v402_v14  ;;  %v211_v11 = vrot.slane %v142_v2, %v412_v24  ;;  %s286_s14 = sld [smem:[#allocation7 + $0x9]]  ;;  %v161_v13 = vstv %s435_s2 }
  0x55   :  { %v152_v12 = vadd.f32 %v151_v3, %v149_v5  ;;  %v164_v15 = vstv %s281_s3 }
  0x56   :  { %v159_v16 = vadd.f32 %v158_v9, %v155_v6  ;;  %v240_v17 = vsel %vm239_vm4, %v238_v8, %v211_v11  ;;  %v165_v18 = vmul.f32 %v164_v15, %v398_v10  ;;  %v167_v19 = vstv %s282_s10 }
  0x57   :  { %v217_v20 = vrot.slane %v152_v12, %v412_v24  ;;  %v168_v21 = vmul.f32 %v167_v19, %v402_v14  ;;  %v171_v31 = vstv %s443_s11 }
  0x58   :  { %v162_v22 = vadd.f32 %v161_v13, %v159_v16  ;;  %v174_v23 = vstv %s284_s12 }
  0x59   :  { %v242_v25 = vsel %vm241_vm5, %v240_v17, %v217_v20  ;;  %v175_v26 = vmul.f32 %v174_v23, %v398_v10  ;;  %v177_v27 = vstv %s285_s13  ;;  %v169_v29 = vadd.f32 %v168_v21, %v165_v18 }
  0x5a   :  { %v223_v28 = vrot.slane %v162_v22, %v412_v24  ;;  %v178_v30 = vmul.f32 %v177_v27, %v402_v14  ;;  %v181_v32 = vstv %s286_s14 }
  0x5b   :  { %v172_v35 = vadd.f32 %v171_v31, %v169_v29 }
  0x5c   :  { %v244_v33 = vsel %vm243_vm6, %v242_v25, %v223_v28  ;;  %v179_v34 = vadd.f32 %v178_v30, %v175_v26 }
  0x5d   :  { %246 = vst [vmem:[%s477_s5] sm:$0xff] %v244_v33  ;;  %248 = vst [vmem:[%s477_s5 + $0xa] sm:$0xff] %v244_v33 }
  0x5e   :  { %v182_v10 = vadd.f32 %v181_v32, %v179_v34 }
  0x60   :  { %v229_v36 = vrot.slane %v182_v10, %v412_v24 }
  0x62   :  { %v245_v37 = vsel %vm231_vm0, %v172_v35, %v229_v36 }
  0x63   :  { %247 = vst [vmem:[%s477_s5 + $0x8] sm:$0x3] %v245_v37  ;;  %249 = vst [vmem:[%s477_s5 + $0x12] sm:$0x3] %v245_v37 }
  0x64   :  { %254 = vsyncpa [#allocation3], 1 }
  0x65   :  { %255 = vsyncpa [#allocation5], 1 }
  0x66   :  { %256 = vsyncpa [#allocation8], 1 }

</bundles_post_ra>
